<compile_context>
chip_gen: v5e
topology: v5e:2x2
jax: 0.10.0
libtpu: 0.0.40
codegen_flags: <defaults>
</compile_context>

<pallas_src>
import jax
import jax.numpy as jnp
from jax.experimental import pallas as pl
from jax.experimental.pallas import tpu as pltpu


def _fusion_classifier_kernel(gcn_ref, cnn_ref, w1g_ref, w1c_ref, b1_ref,
                              w2_ref, b2_ref, o_ref):
    # First linear with the concat fused away:
    #   cat(g, c) @ W1 == g @ W1[:Fg] + c @ W1[Fg:]
    h = jnp.dot(gcn_ref[...], w1g_ref[...], preferred_element_type=jnp.float32)
    h = h + jnp.dot(cnn_ref[...], w1c_ref[...],
                    preferred_element_type=jnp.float32)
    h = h + b1_ref[...]                      # b1 is (1, 64), broadcasts over rows

    # Dropout(0.5): identity in eval/inference mode.
    # TODO(synk): training-mode dropout (random mask + 1/keep_prob scaling) not implemented.
    h = jnp.maximum(h, 0.0)                  # ReLU

    # Classifier (64 -> 1), emitted lane-dense: contract the hidden dim of the
    # (1, 64) w2 row against h's hidden dim (A @ B^T pattern) so the per-tile
    # result is a (1, tile_b) row instead of a strided (tile_b, 1) column.
    logit = jnp.einsum("oh,bh->ob", w2_ref[...], h,
                       preferred_element_type=jnp.float32)
    o_ref[...] = jax.nn.sigmoid(logit + b2_ref[...]).astype(o_ref.dtype)


def _round_up(x, m):
    return ((x + m - 1) // m) * m


def _cdiv(a, b):
    return -(-a // b)


def _vmem_budget_and_limit():
    """Generation-aware VMEM budget (~1/4 of physical, clamped to 12-32 MiB)
    plus the scoped-VMEM limit handed to the compiler (budget + headroom)."""
    try:
        cap = int(getattr(pltpu.get_tpu_info(), "vmem_capacity_bytes", 64 << 20))
    except Exception:            # query unavailable -> conservative (v7x-sized)
        cap = 64 << 20
    budget = min(32 << 20, max(12 << 20, cap // 4))
    return budget, budget + (16 << 20)


def _pick_tile_b(batch, fg, fc, in_itemsize, w_itemsize, hidden,
                 vmem_budget_bytes, tile_b_max=2048):
    """Largest batch tile whose double-buffered streams + resident weights fit
    the VMEM budget; guarantees >=2 lane-aligned tiles for large batches so
    v7x megacore gets work on both TensorCores."""
    lane, sub = 128, 8
    # Resident, single-buffered weights + biases (pl.Buffered(1)), with VMEM
    # tile padding (rows -> x8 sublanes, cols -> x128 lanes).
    resident = ((_round_up(fg, sub) + _round_up(fc, sub))
                * _round_up(hidden, lane) * w_itemsize
                + 3 * sub * lane * 4)                     # b1, w2 row, b2
    stream_budget = max(vmem_budget_bytes - resident, 2 << 20)
    # Double-buffered activation streams + double-buffered (1, tile_b) output.
    bytes_per_row = (2 * in_itemsize * (_round_up(fg, lane) + _round_up(fc, lane))
                     + 2 * 4)
    max_tile = min(stream_budget // bytes_per_row, tile_b_max)
    max_tile = max((max_tile // lane) * lane, lane)
    if batch <= 2 * lane:
        # Tiny batch: one sublane-aligned tile; splitting only adds per-step
        # overhead (even on v7x megacore).
        return _round_up(batch, sub)
    # Multi-tile: lane-aligned tiles (keeps the lane-dense out spec legal) and
    # at least 2 tiles for megacore.
    return min(max_tile, _round_up(_cdiv(batch, 2), lane))


def fusion_and_classifier(gcn_out, cnn_out, w1, b1, w2, b2, *, tile_b=None):
    """sigmoid(ReLU(cat(gcn_out, cnn_out) @ w1 + b1) @ w2 + b2) -> (B, 1) f32.

    gcn_out: (B, Fg) f32/bf16   cnn_out: (B, Fc) f32/bf16
    w1: (Fg+Fc, 64)  b1: (64,)  w2: (64, 1)  b2: (1,)   (x @ W layouts)
    """
    B, Fg = gcn_out.shape
    Bc, Fc = cnn_out.shape
    assert Bc == B, "gcn_out / cnn_out batch mismatch"
    H = w1.shape[1]

    # Split W1 so the concat becomes two matmuls; match weight dtype to the
    # activations so bf16 inputs keep the native bf16 MXU path (accumulation
    # stays f32 via preferred_element_type).
    w1g = w1[:Fg, :].astype(gcn_out.dtype)
    w1c = w1[Fg:, :].astype(cnn_out.dtype)
    b1_2d = b1.reshape(1, H).astype(jnp.float32)
    w2_row = w2.reshape(1, H).astype(jnp.float32)   # (64, 1) column -> (1, 64) row
    b2_2d = b2.reshape(1, 1).astype(jnp.float32)

    vmem_budget, vmem_limit = _vmem_budget_and_limit()
    if tile_b is None:
        tile_b = _pick_tile_b(B, Fg, Fc, gcn_out.dtype.itemsize,
                              w1g.dtype.itemsize, H, vmem_budget)
    num_tiles = _cdiv(B, tile_b)

    cost = pl.CostEstimate(
        flops=2 * B * (Fg + Fc) * H + 2 * B * H,
        transcendentals=B,
        bytes_accessed=(B * Fg * gcn_out.dtype.itemsize
                        + B * Fc * cnn_out.dtype.itemsize
                        + (Fg + Fc) * H * w1g.dtype.itemsize
                        + (2 * H + 1) * 4 + B * 4))

    def call(single_buffer_invariants):
        if single_buffer_invariants:
            # Block-invariant operands: resident in VMEM, single-buffered.
            const = lambda s: pl.BlockSpec(s, lambda i: (0,) * len(s),
                                           pipeline_mode=pl.Buffered(1))
        else:
            const = lambda s: pl.BlockSpec(s, lambda i: (0,) * len(s))
        return pl.pallas_call(
            _fusion_classifier_kernel,
            # Lane-dense output: one (1, tile_b) row per batch tile.
            out_shape=jax.ShapeDtypeStruct((1, num_tiles * tile_b), jnp.float32),
            grid=(num_tiles,),   # non-divisible B -> masked edge block, no pad
            in_specs=[
                pl.BlockSpec((tile_b, Fg), lambda i: (i, 0)),   # gcn activations
                pl.BlockSpec((tile_b, Fc), lambda i: (i, 0)),   # cnn activations
                const((Fg, H)),          # W1 gcn half (resident)
                const((Fc, H)),          # W1 cnn half (resident)
                const((1, H)),           # b1
                const((1, H)),           # w2 as a row
                const((1, 1)),           # b2
            ],
            out_specs=pl.BlockSpec((1, tile_b), lambda i: (0, i)),
            compiler_params=pltpu.CompilerParams(
                dimension_semantics=("parallel",),
                vmem_limit_bytes=vmem_limit),
            cost_estimate=cost,
        )(gcn_out, cnn_out, w1g, w1c, b1_2d, w2_row, b2_2d)

    try:
        out_row = call(single_buffer_invariants=True)
    except Exception:
        # Older jax/Mosaic without BlockSpec pipeline_mode / pl.Buffered:
        # fall back to default double-buffered invariant operands.
        out_row = call(single_buffer_invariants=False)

    # (1, num_tiles*tile_b) -> (B, 1); columns past B come from the masked edge
    # block (garbage rows) and are sliced off here.
    return out_row.reshape(-1, 1)[:B]


def _init_linear(key, in_features, out_features):
    """Deterministic init matching nn.Linear's U(-1/sqrt(in), 1/sqrt(in))."""
    kw, kb = jax.random.split(key)
    bound = 1.0 / jnp.sqrt(jnp.float32(in_features))
    w = jax.random.uniform(kw, (in_features, out_features), jnp.float32,
                           minval=-bound, maxval=bound)   # (in, out): x @ W + b
    b = jax.random.uniform(kb, (out_features,), jnp.float32,
                           minval=-bound, maxval=bound)
    return w, b


def _reference(gcn_out, cnn_out, w1, b1, w2, b2):
    x = jnp.concatenate([gcn_out, cnn_out], axis=1)
    return jax.nn.sigmoid(jnp.maximum(x @ w1 + b1, 0.0) @ w2 + b2)


if __name__ == "__main__":
    key = jax.random.PRNGKey(0)
    k_gcn, k_cnn, k_l1, k_l2 = jax.random.split(key, 4)

    # Small shapes consistent with the module: batch=8, gcn/cnn features=16.
    B, Fg, Fc, H = 8, 16, 16, 64
    gcn_out = jax.random.normal(k_gcn, (B, Fg), jnp.float32)
    cnn_out = jax.random.normal(k_cnn, (B, Fc), jnp.float32)
    w1, b1 = _init_linear(k_l1, Fg + Fc, H)     # fusion_layer
    w2, b2 = _init_linear(k_l2, H, 1)           # classifier

    out = jax.block_until_ready(
        fusion_and_classifier(gcn_out, cnn_out, w1, b1, w2, b2))
    ref = _reference(gcn_out, cnn_out, w1, b1, w2, b2)
    assert out.shape == (B, 1)
    assert jnp.allclose(out, ref, atol=2e-5, rtol=2e-5)

    # Non-multiple-of-8 batch: handled by the masked edge block (no jnp.pad).
    B2 = 12
    gcn2 = jax.random.normal(k_gcn, (B2, Fg), jnp.float32)
    cnn2 = jax.random.normal(k_cnn, (B2, Fc), jnp.float32)
    out2 = jax.block_until_ready(
        fusion_and_classifier(gcn2, cnn2, w1, b1, w2, b2))
    ref2 = _reference(gcn2, cnn2, w1, b1, w2, b2)
    assert out2.shape == (B2, 1)
    assert jnp.allclose(out2, ref2, atol=2e-5, rtol=2e-5)

    # Multi-tile path (forced small tile): 3 batch tiles, partial last tile.
    B3 = 300
    gcn3 = jax.random.normal(k_gcn, (B3, Fg), jnp.float32)
    cnn3 = jax.random.normal(k_cnn, (B3, Fc), jnp.float32)
    out3 = jax.block_until_ready(
        fusion_and_classifier(gcn3, cnn3, w1, b1, w2, b2, tile_b=128))
    ref3 = _reference(gcn3, cnn3, w1, b1, w2, b2)
    assert out3.shape == (B3, 1)
    assert jnp.allclose(out3, ref3, atol=2e-5, rtol=2e-5)

    print("KERNEL_OK")
</pallas_src>

<mosaic_0001>
module attributes {stable_mosaic.version = 11 : i64} {
  func.func @_fusion_classifier_kernel(%arg0: i32, %arg1: memref<8x16xf32, #tpu.memory_space<vmem>>, %arg2: memref<8x16xf32, #tpu.memory_space<vmem>>, %arg3: memref<16x64xf32, #tpu.memory_space<vmem>>, %arg4: memref<16x64xf32, #tpu.memory_space<vmem>>, %arg5: memref<1x64xf32, #tpu.memory_space<vmem>>, %arg6: memref<1x64xf32, #tpu.memory_space<vmem>>, %arg7: memref<1x1xf32, #tpu.memory_space<vmem>>, %arg8: memref<1x8xf32, #tpu.memory_space<vmem>>) attributes {dimension_semantics = [#tpu.dimension_semantics<parallel>], iteration_bounds = array<i64: 1>, scalar_prefetch = 0 : i64, scratch_operands = 0 : i64, tpu.core_type = #tpu.core_type<tc>, window_params = [{transform_indices = @transform_0, window_bounds = array<i64: 8, 16>}, {transform_indices = @transform_1, window_bounds = array<i64: 8, 16>}, {pipeline_mode = #tpu.pipeline_mode<synchronous>, transform_indices = @transform_2, window_bounds = array<i64: 16, 64>}, {pipeline_mode = #tpu.pipeline_mode<synchronous>, transform_indices = @transform_3, window_bounds = array<i64: 16, 64>}, {pipeline_mode = #tpu.pipeline_mode<synchronous>, transform_indices = @transform_4, window_bounds = array<i64: 1, 64>}, {pipeline_mode = #tpu.pipeline_mode<synchronous>, transform_indices = @transform_5, window_bounds = array<i64: 1, 64>}, {pipeline_mode = #tpu.pipeline_mode<synchronous>, transform_indices = @transform_6, window_bounds = array<i64: 1, 1>}, {transform_indices = @transform_7, window_bounds = array<i64: 1, 8>}]} {
    %c0 = arith.constant 0 : index
    %c0_0 = arith.constant 0 : index
    %0 = vector.load %arg1[%c0, %c0_0] : memref<8x16xf32, #tpu.memory_space<vmem>>, vector<8x16xf32>
    %c0_1 = arith.constant 0 : index
    %c0_2 = arith.constant 0 : index
    %1 = vector.load %arg3[%c0_1, %c0_2] : memref<16x64xf32, #tpu.memory_space<vmem>>, vector<16x64xf32>
    %cst = arith.constant dense<0.000000e+00> : vector<8x64xf32>
    %2 = tpu.matmul %0, %1, %cst {dimension_numbers = #tpu.dot_dimension_numbers<[1], [0], [0], [1], [0, 0, 1, 1], [], []>} : vector<8x16xf32>, vector<16x64xf32>, vector<8x64xf32> -> vector<8x64xf32>
    %c0_3 = arith.constant 0 : index
    %c0_4 = arith.constant 0 : index
    %3 = vector.load %arg2[%c0_3, %c0_4] : memref<8x16xf32, #tpu.memory_space<vmem>>, vector<8x16xf32>
    %c0_5 = arith.constant 0 : index
    %c0_6 = arith.constant 0 : index
    %4 = vector.load %arg4[%c0_5, %c0_6] : memref<16x64xf32, #tpu.memory_space<vmem>>, vector<16x64xf32>
    %cst_7 = arith.constant dense<0.000000e+00> : vector<8x64xf32>
    %5 = tpu.matmul %3, %4, %cst_7 {dimension_numbers = #tpu.dot_dimension_numbers<[1], [0], [0], [1], [0, 0, 1, 1], [], []>} : vector<8x16xf32>, vector<16x64xf32>, vector<8x64xf32> -> vector<8x64xf32>
    %6 = arith.addf %2, %5 : vector<8x64xf32>
    %c0_8 = arith.constant 0 : index
    %c0_9 = arith.constant 0 : index
    %7 = vector.load %arg5[%c0_8, %c0_9] : memref<1x64xf32, #tpu.memory_space<vmem>>, vector<1x64xf32>
    %8 = vector.broadcast %7 : vector<1x64xf32> to vector<8x64xf32>
    %9 = arith.addf %6, %8 : vector<8x64xf32>
    %cst_10 = arith.constant 0.000000e+00 : f32
    %10 = vector.broadcast %cst_10 : f32 to vector<8x64xf32>
    %11 = arith.maximumf %9, %10 : vector<8x64xf32>
    %c0_11 = arith.constant 0 : index
    %c0_12 = arith.constant 0 : index
    %12 = vector.load %arg6[%c0_11, %c0_12] : memref<1x64xf32, #tpu.memory_space<vmem>>, vector<1x64xf32>
    "tpu.trace_start"() <{level = 10 : i32, message = "oh,bh->ob"}> : () -> ()
    %cst_13 = arith.constant dense<0.000000e+00> : vector<1x8xf32>
    %13 = tpu.matmul %12, %11, %cst_13 {dimension_numbers = #tpu.dot_dimension_numbers<[1], [1], [0], [0], [0, 0, 1, 0], [], []>} : vector<1x64xf32>, vector<8x64xf32>, vector<1x8xf32> -> vector<1x8xf32>
    "tpu.trace_stop"() : () -> ()
    %c0_14 = arith.constant 0 : index
    %c0_15 = arith.constant 0 : index
    %14 = vector.load %arg7[%c0_14, %c0_15] : memref<1x1xf32, #tpu.memory_space<vmem>>, vector<1x1xf32>
    %15 = vector.broadcast %14 : vector<1x1xf32> to vector<1x8xf32>
    %16 = arith.addf %13, %15 : vector<1x8xf32>
    %17 = arith.negf %16 : vector<1x8xf32>
    %18 = math.exp %17 : vector<1x8xf32>
    %cst_16 = arith.constant 1.000000e+00 : f32
    %19 = vector.broadcast %cst_16 : f32 to vector<1x8xf32>
    %20 = arith.addf %19, %18 : vector<1x8xf32>
    %21 = arith.divf %19, %20 : vector<1x8xf32>
    %c0_17 = arith.constant 0 : index
    %c0_18 = arith.constant 0 : index
    %22 = vector.load %arg8[%c0_17, %c0_18] : memref<1x8xf32, #tpu.memory_space<vmem>>, vector<1x8xf32>
    tpu.vector_store %arg8[%c0_17, %c0_18], %21 {strides = array<i32>} : memref<1x8xf32, #tpu.memory_space<vmem>>, vector<1x8xf32>,
    return
  }
  func.func @transform_0(%arg0: i32) -> (i32, i32) {
    %c0_i32 = arith.constant 0 : i32
    %c0_i32_0 = arith.constant 0 : i32
    return %arg0, %c0_i32 : i32, i32
  }
  func.func @transform_1(%arg0: i32) -> (i32, i32) {
    %c0_i32 = arith.constant 0 : i32
    %c0_i32_0 = arith.constant 0 : i32
    return %arg0, %c0_i32 : i32, i32
  }
  func.func @transform_2(%arg0: i32) -> (i32, i32) {
    %c0_i32 = arith.constant 0 : i32
    %c0_i32_0 = arith.constant 0 : i32
    %c0_i32_1 = arith.constant 0 : i32
    return %c0_i32, %c0_i32_0 : i32, i32
  }
  func.func @transform_3(%arg0: i32) -> (i32, i32) {
    %c0_i32 = arith.constant 0 : i32
    %c0_i32_0 = arith.constant 0 : i32
    %c0_i32_1 = arith.constant 0 : i32
    return %c0_i32, %c0_i32_0 : i32, i32
  }
  func.func @transform_4(%arg0: i32) -> (i32, i32) {
    %c0_i32 = arith.constant 0 : i32
    %c0_i32_0 = arith.constant 0 : i32
    %c0_i32_1 = arith.constant 0 : i32
    return %c0_i32, %c0_i32_0 : i32, i32
  }
  func.func @transform_5(%arg0: i32) -> (i32, i32) {
    %c0_i32 = arith.constant 0 : i32
    %c0_i32_0 = arith.constant 0 : i32
    %c0_i32_1 = arith.constant 0 : i32
    return %c0_i32, %c0_i32_0 : i32, i32
  }
  func.func @transform_6(%arg0: i32) -> (i32, i32) {
    %c0_i32 = arith.constant 0 : i32
    %c0_i32_0 = arith.constant 0 : i32
    %c0_i32_1 = arith.constant 0 : i32
    return %c0_i32, %c0_i32_0 : i32, i32
  }
  func.func @transform_7(%arg0: i32) -> (i32, i32) {
    %c0_i32 = arith.constant 0 : i32
    %c0_i32_0 = arith.constant 0 : i32
    return %c0_i32, %arg0 : i32, i32
  }
}

module attributes {stable_mosaic.version = 11 : i64} {
  func.func @_fusion_classifier_kernel(%arg0: i32, %arg1: memref<8x16xf32, #tpu.memory_space<vmem>>, %arg2: memref<8x16xf32, #tpu.memory_space<vmem>>, %arg3: memref<16x64xf32, #tpu.memory_space<vmem>>, %arg4: memref<16x64xf32, #tpu.memory_space<vmem>>, %arg5: memref<1x64xf32, #tpu.memory_space<vmem>>, %arg6: memref<1x64xf32, #tpu.memory_space<vmem>>, %arg7: memref<1x1xf32, #tpu.memory_space<vmem>>, %arg8: memref<1x8xf32, #tpu.memory_space<vmem>>) attributes {dimension_semantics = [#tpu.dimension_semantics<parallel>], iteration_bounds = array<i64: 1>, scalar_prefetch = 0 : i64, scratch_operands = 0 : i64, tpu.core_type = #tpu.core_type<tc>, window_params = [{transform_indices = @transform_0, window_bounds = array<i64: 8, 16>}, {transform_indices = @transform_1, window_bounds = array<i64: 8, 16>}, {pipeline_mode = #tpu.pipeline_mode<synchronous>, transform_indices = @transform_2, window_bounds = array<i64: 16, 64>}, {pipeline_mode = #tpu.pipeline_mode<synchronous>, transform_indices = @transform_3, window_bounds = array<i64: 16, 64>}, {pipeline_mode = #tpu.pipeline_mode<synchronous>, transform_indices = @transform_4, window_bounds = array<i64: 1, 64>}, {pipeline_mode = #tpu.pipeline_mode<synchronous>, transform_indices = @transform_5, window_bounds = array<i64: 1, 64>}, {pipeline_mode = #tpu.pipeline_mode<synchronous>, transform_indices = @transform_6, window_bounds = array<i64: 1, 1>}, {transform_indices = @transform_7, window_bounds = array<i64: 1, 8>}]} {
    %c0 = arith.constant 0 : index
    %c0_0 = arith.constant 0 : index
    %0 = vector.load %arg1[%c0, %c0_0] : memref<8x16xf32, #tpu.memory_space<vmem>>, vector<8x16xf32>
    %c0_1 = arith.constant 0 : index
    %c0_2 = arith.constant 0 : index
    %1 = vector.load %arg3[%c0_1, %c0_2] : memref<16x64xf32, #tpu.memory_space<vmem>>, vector<16x64xf32>
    %cst = arith.constant dense<0.000000e+00> : vector<8x64xf32>
    %2 = tpu.matmul %0, %1, %cst {dimension_numbers = #tpu.dot_dimension_numbers<[1], [0], [0], [1], [0, 0, 1, 1], [], []>} : vector<8x16xf32>, vector<16x64xf32>, vector<8x64xf32> -> vector<8x64xf32>
    %c0_3 = arith.constant 0 : index
    %c0_4 = arith.constant 0 : index
    %3 = vector.load %arg2[%c0_3, %c0_4] : memref<8x16xf32, #tpu.memory_space<vmem>>, vector<8x16xf32>
    %c0_5 = arith.constant 0 : index
    %c0_6 = arith.constant 0 : index
    %4 = vector.load %arg4[%c0_5, %c0_6] : memref<16x64xf32, #tpu.memory_space<vmem>>, vector<16x64xf32>
    %cst_7 = arith.constant dense<0.000000e+00> : vector<8x64xf32>
    %5 = tpu.matmul %3, %4, %cst_7 {dimension_numbers = #tpu.dot_dimension_numbers<[1], [0], [0], [1], [0, 0, 1, 1], [], []>} : vector<8x16xf32>, vector<16x64xf32>, vector<8x64xf32> -> vector<8x64xf32>
    %6 = arith.addf %2, %5 : vector<8x64xf32>
    %c0_8 = arith.constant 0 : index
    %c0_9 = arith.constant 0 : index
    %7 = vector.load %arg5[%c0_8, %c0_9] : memref<1x64xf32, #tpu.memory_space<vmem>>, vector<1x64xf32>
    %8 = vector.broadcast %7 : vector<1x64xf32> to vector<8x64xf32>
    %9 = arith.addf %6, %8 : vector<8x64xf32>
    %cst_10 = arith.constant 0.000000e+00 : f32
    %10 = vector.broadcast %cst_10 : f32 to vector<8x64xf32>
    %11 = arith.maximumf %9, %10 : vector<8x64xf32>
    %c0_11 = arith.constant 0 : index
    %c0_12 = arith.constant 0 : index
    %12 = vector.load %arg6[%c0_11, %c0_12] : memref<1x64xf32, #tpu.memory_space<vmem>>, vector<1x64xf32>
    "tpu.trace_start"() <{level = 10 : i32, message = "oh,bh->ob"}> : () -> ()
    %cst_13 = arith.constant dense<0.000000e+00> : vector<1x8xf32>
    %13 = tpu.matmul %12, %11, %cst_13 {dimension_numbers = #tpu.dot_dimension_numbers<[1], [1], [0], [0], [0, 0, 1, 0], [], []>} : vector<1x64xf32>, vector<8x64xf32>, vector<1x8xf32> -> vector<1x8xf32>
    "tpu.trace_stop"() : () -> ()
    %c0_14 = arith.constant 0 : index
    %c0_15 = arith.constant 0 : index
    %14 = vector.load %arg7[%c0_14, %c0_15] : memref<1x1xf32, #tpu.memory_space<vmem>>, vector<1x1xf32>
    %15 = vector.broadcast %14 : vector<1x1xf32> to vector<1x8xf32>
    %16 = arith.addf %13, %15 : vector<1x8xf32>
    %17 = arith.negf %16 : vector<1x8xf32>
    %18 = math.exp %17 : vector<1x8xf32>
    %cst_16 = arith.constant 1.000000e+00 : f32
    %19 = vector.broadcast %cst_16 : f32 to vector<1x8xf32>
    %20 = arith.addf %19, %18 : vector<1x8xf32>
    %21 = arith.divf %19, %20 : vector<1x8xf32>
    %c0_17 = arith.constant 0 : index
    %c0_18 = arith.constant 0 : index
    %22 = vector.load %arg8[%c0_17, %c0_18] : memref<1x8xf32, #tpu.memory_space<vmem>>, vector<1x8xf32>
    tpu.vector_store %arg8[%c0_17, %c0_18], %21 {strides = array<i32>} : memref<1x8xf32, #tpu.memory_space<vmem>>, vector<1x8xf32>,
    return
  }
  func.func @transform_0(%arg0: i32) -> (i32, i32) {
    %c0_i32 = arith.constant 0 : i32
    %c0_i32_0 = arith.constant 0 : i32
    return %arg0, %c0_i32 : i32, i32
  }
  func.func @transform_1(%arg0: i32) -> (i32, i32) {
    %c0_i32 = arith.constant 0 : i32
    %c0_i32_0 = arith.constant 0 : i32
    return %arg0, %c0_i32 : i32, i32
  }
  func.func @transform_2(%arg0: i32) -> (i32, i32) {
    %c0_i32 = arith.constant 0 : i32
    %c0_i32_0 = arith.constant 0 : i32
    %c0_i32_1 = arith.constant 0 : i32
    return %c0_i32, %c0_i32_0 : i32, i32
  }
  func.func @transform_3(%arg0: i32) -> (i32, i32) {
    %c0_i32 = arith.constant 0 : i32
    %c0_i32_0 = arith.constant 0 : i32
    %c0_i32_1 = arith.constant 0 : i32
    return %c0_i32, %c0_i32_0 : i32, i32
  }
  func.func @transform_4(%arg0: i32) -> (i32, i32) {
    %c0_i32 = arith.constant 0 : i32
    %c0_i32_0 = arith.constant 0 : i32
    %c0_i32_1 = arith.constant 0 : i32
    return %c0_i32, %c0_i32_0 : i32, i32
  }
  func.func @transform_5(%arg0: i32) -> (i32, i32) {
    %c0_i32 = arith.constant 0 : i32
    %c0_i32_0 = arith.constant 0 : i32
    %c0_i32_1 = arith.constant 0 : i32
    return %c0_i32, %c0_i32_0 : i32, i32
  }
  func.func @transform_6(%arg0: i32) -> (i32, i32) {
    %c0_i32 = arith.constant 0 : i32
    %c0_i32_0 = arith.constant 0 : i32
    %c0_i32_1 = arith.constant 0 : i32
    return %c0_i32, %c0_i32_0 : i32, i32
  }
  func.func @transform_7(%arg0: i32) -> (i32, i32) {
    %c0_i32 = arith.constant 0 : i32
    %c0_i32_0 = arith.constant 0 : i32
    return %c0_i32, %arg0 : i32, i32
  }
}

</mosaic_0001>

<bundles_post_ra>
// kernel: tpu_custom_call.1
= control target key start
LH: loop header
LB: loop body
LE: loop exit
PB: predicated region body
PF: predicated region fallthrough
CT: control target
= control target key end

     0   :  { %s441_s0 = inlined_call_operand.hbm [shape: f32[8,16], index: 0, kind: input, shape index: {}]   ;;  %s442_s1 = inlined_call_operand.hbm [shape: f32[8,16], index: 1, kind: input, shape index: {}]   ;;  %s443_s2 = inlined_call_operand.hbm [shape: f32[16,64], index: 2, kind: input, shape index: {}]   ;;  %s444_s3 = inlined_call_operand.hbm [shape: f32[16,64], index: 3, kind: input, shape index: {}]   ;;  %s445_s4 = inlined_call_operand.vmem [shape: f32[1,64], index: 4, kind: input, shape index: {}]   ;;  %s446_s5 = inlined_call_operand.vmem [shape: f32[1,64], index: 5, kind: input, shape index: {}]   ;;  %s447_s6 = inlined_call_operand.<no memory space> [shape: f32[1,1], index: 6, kind: input, shape index: {}]   ;;  %s448_s7 = inlined_call_operand.hbm [shape: f32[1,8], index: 7, kind: output, shape index: {}]  }
   0x1   :  { %v12_v0 = vstv %s447_s6 }
   0x2   :  { %13 = vst [vmem:[#allocation2] sm:$0x1] %v12_v0 }
   0x3   :  { %14 = vsyncpa [#allocation4], 0 }
   0x4   :  { %15 = vsyncpa [#allocation7], 0 }
   0x5   :  { %16 = vsyncpa [#allocation10], 0  ;;  %s34_s28 = sshll.u32 %s442_s1, 4  ;;  %s35_s28 = int_to_ptr.hbm [resolvable:$true] %s34_s28 }
   0x6   :  { %17 = vsyncpa [#allocation5], 0  ;;  %s369_s29 = smov [#allocation6]   ;;  %s23_s10 = sshll.u32 %s441_s0, 4  ;;  %s24_s10 = int_to_ptr.hbm [resolvable:$true] %s23_s10 }
   0x7   :  { %s36_s30 = sshll.u32 %s369_s29, 4  ;;  %s370_s6 = smov [#allocation3]   ;;  %s37_s30 = int_to_ptr.vmem [resolvable:$true] %s36_s30 }
   0x8   :  { %39 = dma.hbm_to_vmem [thread:$0]  %s35_s28, 128, %s37_s30, [#allocation7]  }
   0x9   :  { %s25_s11 = sshll.u32 %s370_s6, 4  ;;  %s44_s14 = sshll.u32 %s443_s2, 4  ;;  %s26_s11 = int_to_ptr.vmem [resolvable:$true] %s25_s11  ;;  %s45_s14 = int_to_ptr.hbm [resolvable:$true] %s44_s14 }
   0xa   :  { %28 = dma.hbm_to_vmem [thread:$0]  %s24_s10, 128, %s26_s11, [#allocation4]  }
   0xb   :  { %s371_s1 = smov [#allocation8]   ;;  %s57_s18 = sshll.u32 %s444_s3, 4  ;;  %s58_s18 = int_to_ptr.hbm [resolvable:$true] %s57_s18 }
   0xc   :  { %s46_s15 = sshll.u32 %s371_s1, 4  ;;  %s372_s19 = smov 128   ;;  %s47_s15 = int_to_ptr.vmem [resolvable:$true] %s46_s15 }
   0xd   :  { %s373_s0 = smov 8   ;;  %s374_s20 = smov [#allocation9]  }
   0xe   :  { %52 = dma.hbm_to_vmem [thread:$0]  %s45_s14, 256, %s47_s15, [#allocation7], %s372_s19, %s372_s19, %s373_s0  }
   0xf   :  { %s59_s21 = sshll.u32 %s374_s20, 4  ;;  %s60_s21 = int_to_ptr.vmem [resolvable:$true] %s59_s21 }
  0x10   :  { %65 = dma.hbm_to_vmem [thread:$0]  %s58_s18, 256, %s60_s21, [#allocation10], %s372_s19, %s372_s19, %s373_s0  }
  0x11   :  { %361 = dma.done.wait [#allocation4], 128  }
  0x12   :  { %362 = vsyncadd [#allocation4], 4294967168 }
  0x13   :  { %363 = dma.done.wait [#allocation7], 384  }
  0x14   :  { %364 = vsyncadd [#allocation7], 4294966912 }
  0x15   :  { %365 = dma.done.wait [#allocation10], 256  }
  0x16   :  { %366 = vsyncadd [#allocation10], 4294967040  ;;  %v93_v1 = vld [vmem:[#allocation9 + $0x8] sm:$0xff]  ;;  %v90_v2 = vld [vmem:[#allocation8 + $0x8] sm:$0xff]  ;;  %vm94_vm0 = vcmask 130048   ;;  %v375_v8 = vmov 0  }
  0x17   :  { %v92_v3 = vld [vmem:[#allocation9] sm:$0xff]  ;;  %112 = vmatpush.msra.mxu0 %v93_v1  ;;  %135 = vmatpush.msra.mxu1 %v90_v2  ;;  %v89_v4 = vld [vmem:[#allocation8] sm:$0xff]  ;;  %v91_v5 = vld [vmem:[#allocation6] sm:$0xff]  ;;  %vm155_vm1 = vcmask 523264   ;;  %s210_s26 = sshll.u32 %s448_s7, 4  ;;  %vm201_vm5 = vcmask 57344   ;;  %s211_s26 = int_to_ptr.hbm [resolvable:$true] %s210_s26 }
  0x18   :  { %v88_v6 = vld [vmem:[#allocation3] sm:$0xff]  ;;  %v148_v7 = vld [vmem:[#allocation2] sm:$0x1]  ;;  %235 = vset.pattern.permute.xlu0 %v375_v8 }
  0x19   :  { %113 = vmatpush.msra.mxu0 %v92_v3  ;;  %136 = vmatpush.msra.mxu1 %v89_v4  ;;  %v236_v9 = vld [vmem:[%s445_s4] ss:$0 sm:$0xff]  ;;  %s376_s4 = smov [#allocation11]  }
  0x1a   :  { %222 = vmatmul.msk.f32.vlgmr.msra.gmra.mxu0 %vm94_vm0, %v91_v5  ;;  %223 = vmatmul.msk.f32.vlgmr.msra.gmra.mxu1 %vm94_vm0, %v88_v6  ;;  %v147_v15 = vld [vmem:[%s446_s5] sm:$0x1]  ;;  %s208_s24 = sshll.u32 %s376_s4, 4  ;;  %s209_s24 = int_to_ptr.vmem [resolvable:$true] %s208_s24 }
  0x1b   :  { %151 = vperm.xlu0 %235, %v148_v7  }
  0x8d   :  { %v152_v16 = vpop.permute.xlu0 %151 }
  0x8e   :  { %v154_v17 = vperm.slane %v152_v16, 0 }
  0x97   :  { %v115_v10 = vpop.f32.mrf.mxu0  ;;  %v138_v11 = vpop.f32.mrf.mxu1 }
  0x98   :  { %v139_v12 = vadd.f32 %v138_v11, %v115_v10 }
  0x9a   :  { %v145_v13 = vadd.f32 %v236_v9, %v139_v12 }
  0x9c   :  { %v146_v14 = vmax.f32 %v145_v13, 0.0 }
  0x9e   :  { %224 = vmatpush.xpose.msk.msra.mxu2 %vm155_vm1, %v146_v14 }
  0xa1   :  { %225 = vmatmul.msk.f32.vlgmr.msra.gmra.mxu2 %vm155_vm1, %v147_v15 }
 0x124   :  { %v179_v18 = vpop.f32.mrf.mxu2 }
 0x125   :  { %v180_v19 = vadd.f32 %v179_v18, %v154_v17 }
 0x127   :  { %v226_v20 = vmul.f32 -1.442695, %v180_v19 }
 0x129   :  { %237 = vpow2.f32 %v226_v20 }
 0x12f   :  { %v238_v21 = vpop.eup %237 }
 0x130   :  { %v185_v22 = vadd.f32 1.0, %v238_v21 }
 0x132   :  { %239 = vrcp.f32 %v185_v22  ;;  %v197_v26 = vand.u32 2147483648, %v185_v22  ;;  %v195_v28 = vand.u32 2147483647, %v185_v22  ;;  %vm191_vm3 = vweird.f32 %v185_v22 }
 0x134   :  { %v198_v30 = vor.u32 1.1754944e-38, %v197_v26  ;;  %vm196_vm6 = vcmp.eq.f32.partialorder %v195_v28, 8.507059e+37 }
 0x138   :  { %v240_v23 = vpop.eup %239 }
 0x139   :  { %v187_v24 = vmul.f32 %v240_v23, %v185_v22  ;;  %vm192_vm2 = vweird.f32 %v240_v23 }
 0x13a   :  { %vm193_vm4 = vmor %vm191_vm3, %vm192_vm2 }
 0x13b   :  { %v188_v25 = vsub.f32 1.0, %v187_v24 }
 0x13d   :  { %v189_v27 = vmul.f32 %v240_v23, %v188_v25 }
 0x13f   :  { %v190_v29 = vadd.f32 %v240_v23, %v189_v27 }
 0x141   :  { %v194_v31 = vsel %vm193_vm4, %v240_v23, %v190_v29 }
 0x142   :  { %v199_v32 = vsel %vm196_vm6, %v198_v30, %v194_v31 }
 0x143   :  { %202 = vst.msk [vmem:[#allocation11] sm:$0x1] %vm201_vm5, %v199_v32 }
 0x144   :  { %213 = dma.vmem_to_hbm [thread:$0]  %s209_s24, 16, %s211_s26, [#allocation5]  }
 0x145   :  { %367 = dma.done.wait [#allocation5], 16  }
 0x146   :  { %368 = vsyncadd [#allocation5], 4294967280 }
 0x147   :  { %218 = vsyncpa [#allocation4], 1 }
 0x148   :  { %219 = vsyncpa [#allocation7], 1 }
 0x149   :  { %220 = vsyncpa [#allocation10], 1 }
 0x14a   :  { %221 = vsyncpa [#allocation5], 1 }

// kernel: tpu_custom_call.1
= control target key start
LH: loop header
LB: loop body
LE: loop exit
PB: predicated region body
PF: predicated region fallthrough
CT: control target
= control target key end

     0   :  { %s441_s0 = inlined_call_operand.hbm [shape: f32[8,16], index: 0, kind: input, shape index: {}]   ;;  %s442_s1 = inlined_call_operand.hbm [shape: f32[8,16], index: 1, kind: input, shape index: {}]   ;;  %s443_s2 = inlined_call_operand.hbm [shape: f32[16,64], index: 2, kind: input, shape index: {}]   ;;  %s444_s3 = inlined_call_operand.hbm [shape: f32[16,64], index: 3, kind: input, shape index: {}]   ;;  %s445_s4 = inlined_call_operand.vmem [shape: f32[1,64], index: 4, kind: input, shape index: {}]   ;;  %s446_s5 = inlined_call_operand.vmem [shape: f32[1,64], index: 5, kind: input, shape index: {}]   ;;  %s447_s6 = inlined_call_operand.<no memory space> [shape: f32[1,1], index: 6, kind: input, shape index: {}]   ;;  %s448_s7 = inlined_call_operand.hbm [shape: f32[1,8], index: 7, kind: output, shape index: {}]  }
   0x1   :  { %v12_v0 = vstv %s447_s6 }
   0x2   :  { %13 = vst [vmem:[#allocation2] sm:$0x1] %v12_v0 }
   0x3   :  { %14 = vsyncpa [#allocation4], 0 }
   0x4   :  { %15 = vsyncpa [#allocation7], 0 }
   0x5   :  { %16 = vsyncpa [#allocation10], 0  ;;  %s34_s28 = sshll.u32 %s442_s1, 4  ;;  %s35_s28 = int_to_ptr.hbm [resolvable:$true] %s34_s28 }
   0x6   :  { %17 = vsyncpa [#allocation5], 0  ;;  %s369_s29 = smov [#allocation6]   ;;  %s23_s10 = sshll.u32 %s441_s0, 4  ;;  %s24_s10 = int_to_ptr.hbm [resolvable:$true] %s23_s10 }
   0x7   :  { %s36_s30 = sshll.u32 %s369_s29, 4  ;;  %s370_s6 = smov [#allocation3]   ;;  %s37_s30 = int_to_ptr.vmem [resolvable:$true] %s36_s30 }
   0x8   :  { %39 = dma.hbm_to_vmem [thread:$0]  %s35_s28, 128, %s37_s30, [#allocation7]  }
   0x9   :  { %s25_s11 = sshll.u32 %s370_s6, 4  ;;  %s44_s14 = sshll.u32 %s443_s2, 4  ;;  %s26_s11 = int_to_ptr.vmem [resolvable:$true] %s25_s11  ;;  %s45_s14 = int_to_ptr.hbm [resolvable:$true] %s44_s14 }
   0xa   :  { %28 = dma.hbm_to_vmem [thread:$0]  %s24_s10, 128, %s26_s11, [#allocation4]  }
   0xb   :  { %s371_s1 = smov [#allocation8]   ;;  %s57_s18 = sshll.u32 %s444_s3, 4  ;;  %s58_s18 = int_to_ptr.hbm [resolvable:$true] %s57_s18 }
   0xc   :  { %s46_s15 = sshll.u32 %s371_s1, 4  ;;  %s372_s19 = smov 128   ;;  %s47_s15 = int_to_ptr.vmem [resolvable:$true] %s46_s15 }
   0xd   :  { %s373_s0 = smov 8   ;;  %s374_s20 = smov [#allocation9]  }
   0xe   :  { %52 = dma.hbm_to_vmem [thread:$0]  %s45_s14, 256, %s47_s15, [#allocation7], %s372_s19, %s372_s19, %s373_s0  }
   0xf   :  { %s59_s21 = sshll.u32 %s374_s20, 4  ;;  %s60_s21 = int_to_ptr.vmem [resolvable:$true] %s59_s21 }
  0x10   :  { %65 = dma.hbm_to_vmem [thread:$0]  %s58_s18, 256, %s60_s21, [#allocation10], %s372_s19, %s372_s19, %s373_s0  }
  0x11   :  { %361 = dma.done.wait [#allocation4], 128  }
  0x12   :  { %362 = vsyncadd [#allocation4], 4294967168 }
  0x13   :  { %363 = dma.done.wait [#allocation7], 384  }
  0x14   :  { %364 = vsyncadd [#allocation7], 4294966912 }
  0x15   :  { %365 = dma.done.wait [#allocation10], 256  }
  0x16   :  { %366 = vsyncadd [#allocation10], 4294967040  ;;  %v93_v1 = vld [vmem:[#allocation9 + $0x8] sm:$0xff]  ;;  %v90_v2 = vld [vmem:[#allocation8 + $0x8] sm:$0xff]  ;;  %vm94_vm0 = vcmask 130048   ;;  %v375_v8 = vmov 0  }
  0x17   :  { %v92_v3 = vld [vmem:[#allocation9] sm:$0xff]  ;;  %112 = vmatpush.msra.mxu0 %v93_v1  ;;  %135 = vmatpush.msra.mxu1 %v90_v2  ;;  %v89_v4 = vld [vmem:[#allocation8] sm:$0xff]  ;;  %v91_v5 = vld [vmem:[#allocation6] sm:$0xff]  ;;  %vm155_vm1 = vcmask 523264   ;;  %s210_s26 = sshll.u32 %s448_s7, 4  ;;  %vm201_vm5 = vcmask 57344   ;;  %s211_s26 = int_to_ptr.hbm [resolvable:$true] %s210_s26 }
  0x18   :  { %v88_v6 = vld [vmem:[#allocation3] sm:$0xff]  ;;  %v148_v7 = vld [vmem:[#allocation2] sm:$0x1]  ;;  %235 = vset.pattern.permute.xlu0 %v375_v8 }
  0x19   :  { %113 = vmatpush.msra.mxu0 %v92_v3  ;;  %136 = vmatpush.msra.mxu1 %v89_v4  ;;  %v236_v9 = vld [vmem:[%s445_s4] ss:$0 sm:$0xff]  ;;  %s376_s4 = smov [#allocation11]  }
  0x1a   :  { %222 = vmatmul.msk.f32.vlgmr.msra.gmra.mxu0 %vm94_vm0, %v91_v5  ;;  %223 = vmatmul.msk.f32.vlgmr.msra.gmra.mxu1 %vm94_vm0, %v88_v6  ;;  %v147_v15 = vld [vmem:[%s446_s5] sm:$0x1]  ;;  %s208_s24 = sshll.u32 %s376_s4, 4  ;;  %s209_s24 = int_to_ptr.vmem [resolvable:$true] %s208_s24 }
  0x1b   :  { %151 = vperm.xlu0 %235, %v148_v7  }
  0x8d   :  { %v152_v16 = vpop.permute.xlu0 %151 }
  0x8e   :  { %v154_v17 = vperm.slane %v152_v16, 0 }
  0x97   :  { %v115_v10 = vpop.f32.mrf.mxu0  ;;  %v138_v11 = vpop.f32.mrf.mxu1 }
  0x98   :  { %v139_v12 = vadd.f32 %v138_v11, %v115_v10 }
  0x9a   :  { %v145_v13 = vadd.f32 %v236_v9, %v139_v12 }
  0x9c   :  { %v146_v14 = vmax.f32 %v145_v13, 0.0 }
  0x9e   :  { %224 = vmatpush.xpose.msk.msra.mxu2 %vm155_vm1, %v146_v14 }
  0xa1   :  { %225 = vmatmul.msk.f32.vlgmr.msra.gmra.mxu2 %vm155_vm1, %v147_v15 }
 0x124   :  { %v179_v18 = vpop.f32.mrf.mxu2 }
 0x125   :  { %v180_v19 = vadd.f32 %v179_v18, %v154_v17 }
 0x127   :  { %v226_v20 = vmul.f32 -1.442695, %v180_v19 }
 0x129   :  { %237 = vpow2.f32 %v226_v20 }
 0x12f   :  { %v238_v21 = vpop.eup %237 }
 0x130   :  { %v185_v22 = vadd.f32 1.0, %v238_v21 }
 0x132   :  { %239 = vrcp.f32 %v185_v22  ;;  %v197_v26 = vand.u32 2147483648, %v185_v22  ;;  %v195_v28 = vand.u32 2147483647, %v185_v22  ;;  %vm191_vm3 = vweird.f32 %v185_v22 }
 0x134   :  { %v198_v30 = vor.u32 1.1754944e-38, %v197_v26  ;;  %vm196_vm6 = vcmp.eq.f32.partialorder %v195_v28, 8.507059e+37 }
 0x138   :  { %v240_v23 = vpop.eup %239 }
 0x139   :  { %v187_v24 = vmul.f32 %v240_v23, %v185_v22  ;;  %vm192_vm2 = vweird.f32 %v240_v23 }
 0x13a   :  { %vm193_vm4 = vmor %vm191_vm3, %vm192_vm2 }
 0x13b   :  { %v188_v25 = vsub.f32 1.0, %v187_v24 }
 0x13d   :  { %v189_v27 = vmul.f32 %v240_v23, %v188_v25 }
 0x13f   :  { %v190_v29 = vadd.f32 %v240_v23, %v189_v27 }
 0x141   :  { %v194_v31 = vsel %vm193_vm4, %v240_v23, %v190_v29 }
 0x142   :  { %v199_v32 = vsel %vm196_vm6, %v198_v30, %v194_v31 }
 0x143   :  { %202 = vst.msk [vmem:[#allocation11] sm:$0x1] %vm201_vm5, %v199_v32 }
 0x144   :  { %213 = dma.vmem_to_hbm [thread:$0]  %s209_s24, 16, %s211_s26, [#allocation5]  }
 0x145   :  { %367 = dma.done.wait [#allocation5], 16  }
 0x146   :  { %368 = vsyncadd [#allocation5], 4294967280 }
 0x147   :  { %218 = vsyncpa [#allocation4], 1 }
 0x148   :  { %219 = vsyncpa [#allocation7], 1 }
 0x149   :  { %220 = vsyncpa [#allocation10], 1 }
 0x14a   :  { %221 = vsyncpa [#allocation5], 1 }

</bundles_post_ra>
